<compile_context>
chip_gen: v6e
topology: v6e:2x2x1
jax: 0.10.0
libtpu: 0.0.40
codegen_flags: <defaults>
</compile_context>

<pallas_src>
import jax
import jax.numpy as jnp
from jax.experimental import pallas as pl
from jax.experimental.pallas import tpu as pltpu

_SUBLANE = 8  # f32 sublane count -> batch-tile granularity


def _round_up(n: int, m: int) -> int:
    return ((n + m - 1) // m) * m


def _default_vmem_limit_bytes() -> int:
    # ~75% of physical VMEM, capped at 112 MiB: ~48 MiB on v7x (64 MiB/TC),
    # ~96 MiB on v5e/v6e (128 MiB). Leaves headroom for compiler scratch.
    cap = 64 * 1024 * 1024
    try:
        cap = int(getattr(pltpu.get_tpu_info(), "vmem_capacity_bytes", cap))
    except Exception:
        pass
    return int(min(int(0.75 * cap), 112 * 1024 * 1024))


def generator_kernel(x_ref, w1_ref, b1_ref, w2_ref, b2_ref, o_ref):
    # Linear 1: bf16 MXU operands, f32 accumulation, f32 bias add.
    x = x_ref[...].astype(jnp.bfloat16)
    h = jnp.dot(x, w1_ref[...], preferred_element_type=jnp.float32) + b1_ref[...]
    # LeakyReLU(0.2): single mul + max on the VPU.
    h = jnp.maximum(h, 0.2 * h)
    # Linear 2: bf16 operands, f32 accumulation, f32 bias add.
    y = jnp.dot(h.astype(jnp.bfloat16), w2_ref[...],
                preferred_element_type=jnp.float32) + b2_ref[...]
    # Tanh (EUP) on the true output width only, lane count == output_size.
    o_ref[...] = jnp.tanh(y).astype(o_ref.dtype)


def prepare_params(w1, b1, w2, b2):
    """One-time weight prep (hoisted out of the forward pass): cast weights to bf16
    for the MXU; biases stay f32 (added after f32 accumulation)."""
    return (w1.astype(jnp.bfloat16), b1.astype(jnp.float32),
            w2.astype(jnp.bfloat16), b2.astype(jnp.float32))


def generator_forward(x, params, *, block_m=None, vmem_limit_bytes=None):
    """x: (B, latent) f32; params = prepare_params(w1, b1, w2, b2) with
    w1: (latent, internal) bf16, b1: (1, internal) f32,
    w2: (internal, output) bf16, b2: (1, output) f32.
    Returns (B, output) f32."""
    w1, b1, w2, b2 = params
    B, latent = x.shape
    internal = w1.shape[1]
    output = w2.shape[1]

    if vmem_limit_bytes is None:
        vmem_limit_bytes = _default_vmem_limit_bytes()

    # ---- batch tile size: VMEM budget + >=4 grid steps when B allows, cap 512 ----
    if block_m is None:
        budget = int(0.6 * vmem_limit_bytes)  # headroom for compiler scratch
        # BlockSpec double-buffers every input (even constant-index weights) -> 2x.
        weights_bytes = 2 * (2 * (latent * internal + internal * output)
                             + 4 * (internal + output))
        # double-buffered f32 x/out tiles + f32 h + bf16 in-kernel casts of x and h
        per_row_bytes = (2 * 4 * latent + 2 * 4 * output + 4 * internal
                         + 2 * (latent + internal))
        bm_budget = max(_SUBLANE, (budget - weights_bytes) // max(per_row_bytes, 1))
        # target ~4 grid steps (pipeline overlap + v7x megacore), floor ~256 rows/tile,
        # cap at 512 (HBM-roofline utilization plateaus there).
        bm_steps = max(256, _round_up(max(B // 4, 1), _SUBLANE))
        block_m = int(min(bm_budget, bm_steps, 512))
    block_m = max(_SUBLANE, min(int(block_m), _round_up(B, _SUBLANE)))
    block_m = _round_up(block_m, _SUBLANE)

    # ---- pad batch rows only (sliced off afterwards); no feature-dim padding ----
    B_p = _round_up(B, block_m)
    x_p = jnp.pad(x, ((0, B_p - B), (0, 0))) if B_p != B else x

    grid = (B_p // block_m,)

    cost = pl.CostEstimate(
        flops=2 * B_p * (latent * internal + internal * output),
        transcendentals=B_p * output,  # tanh
        bytes_accessed=(4 * B_p * (latent + output)
                        + 2 * (latent * internal + internal * output)
                        + 4 * (internal + output)),
    )

    out = pl.pallas_call(
        generator_kernel,
        out_shape=jax.ShapeDtypeStruct((B_p, output), jnp.float32),
        grid_spec=pltpu.PrefetchScalarGridSpec(
            num_scalar_prefetch=0,
            grid=grid,
            in_specs=[
                # x tile walks the batch; weights/biases stay VMEM-resident
                # (constant index maps -> DMA'd once, re-used every step).
                pl.BlockSpec((block_m, latent), lambda i: (i, 0)),
                pl.BlockSpec((latent, internal), lambda i: (0, 0)),
                pl.BlockSpec((1, internal), lambda i: (0, 0)),
                pl.BlockSpec((internal, output), lambda i: (0, 0)),
                pl.BlockSpec((1, output), lambda i: (0, 0)),
            ],
            # Last block dim == full array dim (true output width) -> no HBM padding,
            # no post-kernel column slice.
            out_specs=pl.BlockSpec((block_m, output), lambda i: (i, 0)),
        ),
        compiler_params=pltpu.CompilerParams(
            # Batch tiles are independent -> megacore-shardable on v7x.
            dimension_semantics=("parallel",),
            vmem_limit_bytes=int(vmem_limit_bytes),
        ),
        cost_estimate=cost,
    )(x_p, w1, b1, w2, b2)

    return out[:B] if B_p != B else out


def init_params(key, latent_size, output_size, internal_size=16):
    """Deterministic parameter init mirroring nn.Linear default (uniform +-1/sqrt(fan_in))."""
    k1, k2, k3, k4 = jax.random.split(key, 4)
    lim1 = 1.0 / jnp.sqrt(latent_size)
    lim2 = 1.0 / jnp.sqrt(internal_size)
    w1 = jax.random.uniform(k1, (latent_size, internal_size), jnp.float32, -lim1, lim1)
    b1 = jax.random.uniform(k2, (1, internal_size), jnp.float32, -lim1, lim1)
    w2 = jax.random.uniform(k3, (internal_size, output_size), jnp.float32, -lim2, lim2)
    b2 = jax.random.uniform(k4, (1, output_size), jnp.float32, -lim2, lim2)
    return w1, b1, w2, b2


if __name__ == "__main__":
    key = jax.random.PRNGKey(0)
    kx, kp = jax.random.split(key)

    batch = 64
    latent_size = 8
    output_size = 4
    internal_size = 16

    x = jax.random.normal(kx, (batch, latent_size), jnp.float32)
    w1, b1, w2, b2 = init_params(kp, latent_size, output_size, internal_size)
    params = prepare_params(w1, b1, w2, b2)  # hoisted, static across calls

    # Force a small batch tile so the multi-step (pipelined, parallel-axis) path is exercised.
    out = jax.block_until_ready(generator_forward(x, params, block_m=16))

    # Pure-JAX f32 reference (kernel uses bf16 MXU operands -> loosened tolerance).
    h_ref = x @ w1 + b1
    h_ref = jnp.where(h_ref > 0, h_ref, 0.2 * h_ref)
    ref = jnp.tanh(h_ref @ w2 + b2)
    assert out.shape == (batch, output_size)
    assert jnp.allclose(out, ref, atol=2e-2, rtol=2e-2), \
        float(jnp.max(jnp.abs(out - ref)))

    # Also sanity-check the auto tile-size path (single tile at this batch size).
    out2 = jax.block_until_ready(generator_forward(x, params))
    assert out2.shape == (batch, output_size)
    assert jnp.allclose(out2, ref, atol=2e-2, rtol=2e-2)

    print("KERNEL_OK")
</pallas_src>

<mosaic_0001>
module attributes {stable_mosaic.version = 11 : i64} {
  func.func @generator_kernel(%arg0: i32, %arg1: memref<16x8xf32, #tpu.memory_space<vmem>>, %arg2: memref<8x16xbf16, #tpu.memory_space<vmem>>, %arg3: memref<1x16xf32, #tpu.memory_space<vmem>>, %arg4: memref<16x4xbf16, #tpu.memory_space<vmem>>, %arg5: memref<1x4xf32, #tpu.memory_space<vmem>>, %arg6: memref<16x4xf32, #tpu.memory_space<vmem>>) attributes {dimension_semantics = [#tpu.dimension_semantics<parallel>], iteration_bounds = array<i64: 4>, scalar_prefetch = 0 : i64, scratch_operands = 0 : i64, tpu.core_type = #tpu.core_type<tc>, window_params = [{transform_indices = @transform_0, window_bounds = array<i64: 16, 8>}, {pipeline_mode = #tpu.pipeline_mode<synchronous>, transform_indices = @transform_1, window_bounds = array<i64: 8, 16>}, {pipeline_mode = #tpu.pipeline_mode<synchronous>, transform_indices = @transform_2, window_bounds = array<i64: 1, 16>}, {pipeline_mode = #tpu.pipeline_mode<synchronous>, transform_indices = @transform_3, window_bounds = array<i64: 16, 4>}, {pipeline_mode = #tpu.pipeline_mode<synchronous>, transform_indices = @transform_4, window_bounds = array<i64: 1, 4>}, {transform_indices = @transform_5, window_bounds = array<i64: 16, 4>}]} {
    %c0 = arith.constant 0 : index
    %c0_0 = arith.constant 0 : index
    %0 = vector.load %arg1[%c0, %c0_0] : memref<16x8xf32, #tpu.memory_space<vmem>>, vector<16x8xf32>
    %1 = arith.truncf %0 : vector<16x8xf32> to vector<16x8xbf16>
    %c0_1 = arith.constant 0 : index
    %c0_2 = arith.constant 0 : index
    %2 = vector.load %arg2[%c0_1, %c0_2] : memref<8x16xbf16, #tpu.memory_space<vmem>>, vector<8x16xbf16>
    %cst = arith.constant dense<0.000000e+00> : vector<16x16xf32>
    %3 = tpu.matmul %1, %2, %cst {dimension_numbers = #tpu.dot_dimension_numbers<[1], [0], [0], [1], [0, 0, 1, 1], [], []>} : vector<16x8xbf16>, vector<8x16xbf16>, vector<16x16xf32> -> vector<16x16xf32>
    %c0_3 = arith.constant 0 : index
    %c0_4 = arith.constant 0 : index
    %4 = vector.load %arg3[%c0_3, %c0_4] : memref<1x16xf32, #tpu.memory_space<vmem>>, vector<1x16xf32>
    %5 = vector.broadcast %4 : vector<1x16xf32> to vector<16x16xf32>
    %6 = arith.addf %3, %5 : vector<16x16xf32>
    %cst_5 = arith.constant 2.000000e-01 : f32
    %7 = vector.broadcast %cst_5 : f32 to vector<16x16xf32>
    %8 = arith.mulf %7, %6 : vector<16x16xf32>
    %9 = arith.maximumf %6, %8 : vector<16x16xf32>
    %10 = arith.truncf %9 : vector<16x16xf32> to vector<16x16xbf16>
    %c0_6 = arith.constant 0 : index
    %c0_7 = arith.constant 0 : index
    %11 = vector.load %arg4[%c0_6, %c0_7] : memref<16x4xbf16, #tpu.memory_space<vmem>>, vector<16x4xbf16>
    %cst_8 = arith.constant dense<0.000000e+00> : vector<16x4xf32>
    %12 = tpu.matmul %10, %11, %cst_8 {dimension_numbers = #tpu.dot_dimension_numbers<[1], [0], [0], [1], [0, 0, 1, 1], [], []>} : vector<16x16xbf16>, vector<16x4xbf16>, vector<16x4xf32> -> vector<16x4xf32>
    %c0_9 = arith.constant 0 : index
    %c0_10 = arith.constant 0 : index
    %13 = vector.load %arg5[%c0_9, %c0_10] : memref<1x4xf32, #tpu.memory_space<vmem>>, vector<1x4xf32>
    %14 = vector.broadcast %13 : vector<1x4xf32> to vector<16x4xf32>
    %15 = arith.addf %12, %14 : vector<16x4xf32>
    %16 = math.tanh %15 : vector<16x4xf32>
    %c0_11 = arith.constant 0 : index
    %c0_12 = arith.constant 0 : index
    %17 = vector.load %arg6[%c0_11, %c0_12] : memref<16x4xf32, #tpu.memory_space<vmem>>, vector<16x4xf32>
    tpu.vector_store %arg6[%c0_11, %c0_12], %16 {strides = array<i32>} : memref<16x4xf32, #tpu.memory_space<vmem>>, vector<16x4xf32>,
    return
  }
  func.func @transform_0(%arg0: i32) -> (i32, i32) {
    %c0_i32 = arith.constant 0 : i32
    %c0_i32_0 = arith.constant 0 : i32
    return %arg0, %c0_i32 : i32, i32
  }
  func.func @transform_1(%arg0: i32) -> (i32, i32) {
    %c0_i32 = arith.constant 0 : i32
    %c0_i32_0 = arith.constant 0 : i32
    %c0_i32_1 = arith.constant 0 : i32
    return %c0_i32, %c0_i32_0 : i32, i32
  }
  func.func @transform_2(%arg0: i32) -> (i32, i32) {
    %c0_i32 = arith.constant 0 : i32
    %c0_i32_0 = arith.constant 0 : i32
    %c0_i32_1 = arith.constant 0 : i32
    return %c0_i32, %c0_i32_0 : i32, i32
  }
  func.func @transform_3(%arg0: i32) -> (i32, i32) {
    %c0_i32 = arith.constant 0 : i32
    %c0_i32_0 = arith.constant 0 : i32
    %c0_i32_1 = arith.constant 0 : i32
    return %c0_i32, %c0_i32_0 : i32, i32
  }
  func.func @transform_4(%arg0: i32) -> (i32, i32) {
    %c0_i32 = arith.constant 0 : i32
    %c0_i32_0 = arith.constant 0 : i32
    %c0_i32_1 = arith.constant 0 : i32
    return %c0_i32, %c0_i32_0 : i32, i32
  }
  func.func @transform_5(%arg0: i32) -> (i32, i32) {
    %c0_i32 = arith.constant 0 : i32
    %c0_i32_0 = arith.constant 0 : i32
    return %arg0, %c0_i32 : i32, i32
  }
}

</mosaic_0001>

<bundles_post_ra>
// kernel: tpu_custom_call.1
= control target key start
LH: loop header
LB: loop body
LE: loop exit
PB: predicated region body
PF: predicated region fallthrough
CT: control target
= control target key end

     0   :  { %s502_s18 = smov 0   ;;  %s538_s0 = inlined_call_operand.vmem [shape: f32[64,8], index: 0, kind: input, shape index: {}]   ;;  %s539_s1 = inlined_call_operand.vmem [shape: bf16[8,16], index: 1, kind: input, shape index: {}]   ;;  %s540_s2 = inlined_call_operand.vmem [shape: f32[1,16], index: 2, kind: input, shape index: {}]   ;;  %s541_s3 = inlined_call_operand.vmem [shape: bf16[16,4], index: 3, kind: input, shape index: {}]   ;;  %s542_s4 = inlined_call_operand.vmem [shape: f32[1,4], index: 4, kind: input, shape index: {}]   ;;  %s543_s5 = inlined_call_operand.vmem [shape: f32[64,4], index: 5, kind: output, shape index: {}]  }
   0x1 LB: > { %s415_s19 = sadd.s32 4294967295, %s468_s18   ;;  %p419_p0 = scmp.ge.s32.totalorder %s468_s18, 1  ;;  %s468_s18 = sphi %s502_s18, %s15_s18  }
   0x2   : > { %p188_p1 = scmp.lt.s32.totalorder %s468_s18, 5 }
   0x4   : > { %p189_p2 = pnand %p419_p0, %p188_p1 }
   0x5   : > { %s420_s22 = sshll.u32 (!%p189_p2), %s415_s19, 1 }
   0x6   : > { %192 = sbr.rel (%p189_p2) target bundleno = 436 (0x1b4), region = 40  ;;  %p217_p3 = scmp.lt.s32.totalorder (!%p189_p2), %s420_s22, 7 }
   0xb   : > { %v232_v0 = vld [vmem:[%s539_s1] sm:$0xf]  ;;  %vm244_vm0 = vcmask 1043456   ;;  %v470_v1 = vmov 0.0   ;;  %vm471_vm1 = vmmov 0   ;;  %s545_s22 = smov (!%p217_p3, %s420_s22), 7 }
   0xc   : > { %435 = vmatprep.subr.bf16.mxu0 %v470_v1  ;;  %v246_v2 = vsel %vm244_vm0, %v232_v0, 0  ;;  %437 = vmatprep.mubr.msk.bf16.mxu0 %vm471_vm1, %v470_v1  ;;  %s421_s23 = sshll.u32 %s545_s22, 3  ;;  %vm240_vm2 = vcmask 64512   ;;  %v457_v6 = vld [vmem:[%s541_s3] sm:$0xff]   ;;  %vm309_vm3 = vcmask 130048   ;;  %vm356_vm4 = vcmask 31744  }
   0xd   : > { %436 = vmatpush3.bf16.msra.mxu0 %v246_v2  ;;  %441 = vmatprep.subr.bf16.mxu1 %v470_v1  ;;  %s220_s26 = scalar_lea.vmem %s538_s0, %s421_s23  ;;  %v424_v7 = vld [vmem:[%s540_s2] ss:$0 sm:$0xff]  ;;  %s226_s10 = scalar_lea.vmem %s543_s5, %s421_s23 }
   0xe   : > { %443 = vmatprep.mubr.msk.bf16.mxu1 %vm471_vm1, %v470_v1  ;;  %v229_v3 = vld [vmem:[%s220_s26] sm:$0xff]  ;;  %v230_v4 = vld [vmem:[%s220_s26 + $0x8] sm:$0xff]  ;;  %442 = vmatpush3.bf16.msra.mxu1 %v457_v6 }
   0xf   : > { %v231_v5 = vpack.c.bf16 %v230_v4, %v229_v3  ;;  %v426_v19 = vld [vmem:[%s542_s4] ss:$0 sm:$0xff] }
  0x11   : > { %438 = vmatmul.mubr.msk.bf16.vlgmr.msra.gmra.mxu0 %vm240_vm2, %v231_v5 }
  0xd1   : > { %v282_v8 = vpop.f32.mrf.mxu0 }
  0xd2   : > { %v283_v9 = vadd.f32 %v424_v7, %v282_v8 }
  0xd3   : > { %v439_v10 = vpop.f32.mrf.mxu0 }
  0xd4   : > { %v289_v12 = vmul.f32 0.2, %v283_v9 }
  0xd5   : > { %v285_v11 = vpop.f32.mrf.mxu0 }
  0xd6   : > { %v286_v13 = vadd.f32 %v424_v7, %v285_v11  ;;  %v291_v16 = vmax.f32 %v283_v9, %v289_v12 }
  0xd7   : > { %v440_v14 = vpop.f32.mrf.mxu0 }
  0xd8   : > { %v290_v15 = vmul.f32 0.2, %v286_v13 }
  0xda   : > { %v292_v17 = vmax.f32 %v286_v13, %v290_v15 }
  0xdc   : > { %v293_v18 = vpack.c.bf16 %v292_v17, %v291_v16 }
  0xde   : > { %444 = vmatmul.mubr.msk.bf16.vlgmr.msra.gmra.mxu1 %vm309_vm3, %v293_v18 }
 0x19e   : > { %v347_v20 = vpop.f32.mrf.mxu1 }
 0x19f   : > { %v348_v21 = vadd.f32 %v426_v19, %v347_v20 }
 0x1a0   : > { %v445_v22 = vpop.f32.mrf.mxu1 }
 0x1a1   : > { %458 = vtanh.f32 %v348_v21 }
 0x1a2   : > { %v350_v23 = vpop.f32.mrf.mxu1 }
 0x1a3   : > { %v351_v24 = vadd.f32 %v426_v19, %v350_v23 }
 0x1a4   : > { %v446_v25 = vpop.f32.mrf.mxu1 }
 0x1a5   : > { %460 = vtanh.f32 %v351_v24 }
 0x1ae   : > { %v459_v26 = vpop.eup %458 }
 0x1af   : > { %357 = vst.msk [vmem:[%s226_s10] sm:$0xff] %vm356_vm4, %v459_v26 }
 0x1b2   : > { %v461_v27 = vpop.eup %460 }
 0x1b3   : > { %358 = vst.msk [vmem:[%s226_s10 + $0x8] sm:$0xff] %vm356_vm4, %v461_v27 }
 0x1b4 PF: > { %s15_s18 = sadd.s32 1, %s468_s18  }
 0x1b5   : > { %p12_p4 = scmp.ge.s32.totalorder %s15_s18, 6  }
 0x1b7   :  { %14 = sbr.rel (!%p12_p4) target bundleno = 1 (0x1), region = 70 }

</bundles_post_ra>
